<compile_context>
chip_gen: v5e
topology: v5e:2x2
jax: 0.10.0
libtpu: 0.0.40
codegen_flags: <defaults>
</compile_context>

<pallas_src>
import functools

import jax
import jax.numpy as jnp
from jax.experimental import pallas as pl
from jax.experimental.pallas import tpu as pltpu


def _round_up(x, m):
    return ((x + m - 1) // m) * m


def _pad_tile(dim, pref):
    """Pad `dim` to a lane-dense multiple of 128 and pick a tile dividing it.

    Lane-facing dims must be multiples of 128 for unmasked vld/vst.  For small
    dims we still try to produce >=2 blocks so both v7x TensorCores get work on
    the parallel grid axis."""
    assert pref % 128 == 0
    padded = _round_up(dim, 128)
    if padded > pref:
        return _round_up(padded, pref), pref
    if padded % 256 == 0:
        return padded, padded // 2
    return padded, padded


# --------------------------- stage 1: edge aggregation ---------------------------
def _edge_agg_kernel(nnz_ref, ht_ref, x_ref, esc_ref, xe_ref, acc_ref, *,
                     x_resident, k_tile):
    """Xe[i,:] = (sum_k He^T[i,k] @ X[k,:]) * (mean_scale * degE)[i]."""
    i = pl.program_id(0)
    k = pl.program_id(1)

    @pl.when(k == 0)
    def _():
        acc_ref[...] = jnp.zeros_like(acc_ref)

    # Skip MXU work on all-zero incidence tiles (block sparsity, SMEM prefetch).
    @pl.when(nnz_ref[i, k] > 0)
    def _():
        if x_resident:
            row0 = pl.multiple_of(k * k_tile, k_tile)
            x_tile = x_ref[pl.ds(row0, k_tile), :]
        else:
            x_tile = x_ref[...]
        acc_ref[...] += jnp.dot(ht_ref[...], x_tile,
                                preferred_element_type=jnp.float32)

    @pl.when(k == pl.num_programs(1) - 1)
    def _():
        # mean/degE scaling applied to the f32 accumulator (kept out of bf16 H).
        xe_ref[...] = (acc_ref[...] * esc_ref[...]).astype(xe_ref.dtype)


# ----------------- stage 2: vertex aggregation + norm + linear -------------------
def _vertex_out_kernel(nnz_ref, hv_ref, xe_ref, w_ref, b_ref, degv_ref,
                       o_ref, acc_ref, *, xe_resident, k_tile, use_norm):
    i = pl.program_id(0)
    k = pl.program_id(1)

    @pl.when(k == 0)
    def _():
        acc_ref[...] = jnp.zeros_like(acc_ref)

    @pl.when(nnz_ref[i, k] > 0)
    def _():
        if xe_resident:
            row0 = pl.multiple_of(k * k_tile, k_tile)
            xe_tile = xe_ref[pl.ds(row0, k_tile), :]
        else:
            xe_tile = xe_ref[...]
        acc_ref[...] += jnp.dot(hv_ref[...], xe_tile,
                                preferred_element_type=jnp.float32)

    @pl.when(k == pl.num_programs(1) - 1)
    def _():
        xv = acc_ref[...] * degv_ref[...]                      # degV in epilogue
        if use_norm:
            # normalize_l2: X * 1/||row||, zero-norm rows -> 0.
            rn2 = jnp.sum(xv * xv, axis=1, keepdims=True)
            scale = jnp.where(rn2 > 0.0,
                              jax.lax.rsqrt(jnp.maximum(rn2, 1e-36)), 0.0)
            xv = xv * scale
        out = jnp.dot(xv, w_ref[...], preferred_element_type=jnp.float32)
        o_ref[...] = (out + b_ref[...]).astype(o_ref.dtype)


def unigcn_conv2(X, vertex, edges, degE, degV, W_t, b, *, num_edges,
                 first_aggregate="mean", use_norm=True,
                 tile_n=512, tile_e=512, compute_dtype=jnp.bfloat16,
                 resident_budget_bytes=4 * 1024 * 1024):
    """X: [N, C], vertex/edges: [nnz] int32, degE: [E,1], degV: [N,1],
    W_t: [C, heads*out] (Linear weight pre-transposed), b: [1, heads*out]."""
    f32 = jnp.float32
    N, C = X.shape
    E = int(num_edges)
    F = W_t.shape[1]

    Np, tn = _pad_tile(N, tile_n)
    Ep, te = _pad_tile(E, tile_e)
    Cp = _round_up(C, 128)            # lane-dense feature dim
    Fp = _round_up(F, 128)            # lane-dense output dim (unmasked stores)
    n_vb, n_eb = Np // tn, Ep // te
    isz = jnp.dtype(compute_dtype).itemsize
    mib = 1024 * 1024

    vertex = vertex.astype(jnp.int32)
    edges = edges.astype(jnp.int32)

    # ---- host glue: dense 0/1 incidence (exact in bf16); scales stay in f32 ----
    # TODO(synk): replace dense incidence with a block-sparse / gathered
    #             representation; this O(N*E) scatter is the scalability limit.
    Hv_f = jnp.zeros((Np, Ep), f32).at[vertex, edges].add(1.0)     # [Np, Ep]
    Ht_f = jnp.zeros((Ep, Np), f32).at[edges, vertex].add(1.0)     # [Ep, Np]
    count = jnp.sum(Ht_f, axis=1, keepdims=True)                   # [Ep, 1]
    if first_aggregate == "mean":
        inv = jnp.where(count > 0.0, 1.0 / jnp.maximum(count, 1.0), 0.0)
    elif first_aggregate == "sum":
        inv = jnp.ones_like(count)
    else:
        # TODO(synk): 'max'/'min' first_aggregate need segment-max; no matmul form.
        raise NotImplementedError(first_aggregate)

    degE_p = jnp.zeros((Ep, 1), f32).at[:E].set(degE.reshape(E, 1).astype(f32))
    degV_p = jnp.zeros((Np, 1), f32).at[:N].set(degV.reshape(N, 1).astype(f32))
    escale = inv * degE_p                                          # [Ep,1] f32

    He_t = Ht_f.astype(compute_dtype)                              # exact 0/1 in bf16
    Hv = Hv_f.astype(compute_dtype)
    Xp = jnp.zeros((Np, Cp), compute_dtype).at[:N, :C].set(X.astype(compute_dtype))
    Wp = jnp.zeros((Cp, Fp), f32).at[:C, :F].set(W_t.astype(f32))
    bp = jnp.zeros((1, Fp), f32).at[:, :F].set(b.reshape(1, F).astype(f32))

    # Per-tile nnz maps (int32, SMEM scalar prefetch) -> skip MXU on empty tiles.
    eb, vb = edges // te, vertex // tn
    nnz_ev = jnp.zeros((n_eb, n_vb), jnp.int32).at[eb, vb].add(1)  # stage 1
    nnz_ve = jnp.zeros((n_vb, n_eb), jnp.int32).at[vb, eb].add(1)  # stage 2

    x_resident = (Np * Cp * isz) <= resident_budget_bytes
    xe_resident = (Ep * Cp * isz) <= resident_budget_bytes

    # ------------------------------ stage 1 ------------------------------
    x_spec = (pl.BlockSpec((Np, Cp), lambda i, k, nnz: (0, 0)) if x_resident
              else pl.BlockSpec((tn, Cp), lambda i, k, nnz: (k, 0)))
    vmem1 = (2 * te * tn * isz
             + (2 * Np * Cp * isz if x_resident else 2 * tn * Cp * isz)
             + 2 * te * 4 + 2 * te * Cp * isz + te * Cp * 4)
    vmem1_limit = int(min(64 * mib, max(32 * mib, 2 * vmem1)))
    ce1 = pl.CostEstimate(
        flops=2 * Ep * Np * Cp, transcendentals=0,
        bytes_accessed=(Ep * Np + Np * Cp + Ep * Cp) * isz + Ep * 4)

    xe = pl.pallas_call(
        functools.partial(_edge_agg_kernel, x_resident=x_resident, k_tile=tn),
        out_shape=jax.ShapeDtypeStruct((Ep, Cp), compute_dtype),
        grid_spec=pltpu.PrefetchScalarGridSpec(
            num_scalar_prefetch=1,
            grid=(n_eb, n_vb),
            in_specs=[
                pl.BlockSpec((te, tn), lambda i, k, nnz: (i, k)),   # He^T (0/1)
                x_spec,                                             # X
                pl.BlockSpec((te, 1), lambda i, k, nnz: (i, 0)),    # mean*degE
            ],
            out_specs=pl.BlockSpec((te, Cp), lambda i, k, nnz: (i, 0)),
            scratch_shapes=[pltpu.VMEM((te, Cp), jnp.float32)]),
        compiler_params=pltpu.CompilerParams(
            dimension_semantics=("parallel", "arbitrary"),
            vmem_limit_bytes=vmem1_limit),
        cost_estimate=ce1,
    )(nnz_ev, He_t, Xp, escale)

    # ------------------------------ stage 2 ------------------------------
    xe_spec = (pl.BlockSpec((Ep, Cp), lambda i, k, nnz: (0, 0)) if xe_resident
               else pl.BlockSpec((te, Cp), lambda i, k, nnz: (k, 0)))
    vmem2 = (2 * tn * te * isz
             + (2 * Ep * Cp * isz if xe_resident else 2 * te * Cp * isz)
             + 2 * Cp * Fp * 4 + 2 * Fp * 4 + 2 * tn * 4
             + 2 * tn * Fp * 4 + tn * Cp * 4)
    vmem2_limit = int(min(64 * mib, max(32 * mib, 2 * vmem2)))
    ce2 = pl.CostEstimate(
        flops=2 * Np * Ep * Cp + 2 * Np * Cp * Fp, transcendentals=Np,
        bytes_accessed=(Np * Ep + Ep * Cp) * isz
                       + (Cp * Fp + Fp + Np + Np * Fp) * 4)

    # TODO(synk): if the resident f32 W block (Cp*Fp*8 bytes double-buffered)
    #             exceeds ~8-12 MiB, add a grid axis over Fp (v7x has only 64 MiB VMEM).
    out_p = pl.pallas_call(
        functools.partial(_vertex_out_kernel, xe_resident=xe_resident,
                          k_tile=te, use_norm=use_norm),
        out_shape=jax.ShapeDtypeStruct((Np, Fp), jnp.float32),
        grid_spec=pltpu.PrefetchScalarGridSpec(
            num_scalar_prefetch=1,
            grid=(n_vb, n_eb),
            in_specs=[
                pl.BlockSpec((tn, te), lambda i, k, nnz: (i, k)),   # H (0/1)
                xe_spec,                                            # Xe
                pl.BlockSpec((Cp, Fp), lambda i, k, nnz: (0, 0)),   # W (resident)
                pl.BlockSpec((1, Fp), lambda i, k, nnz: (0, 0)),    # bias
                pl.BlockSpec((tn, 1), lambda i, k, nnz: (i, 0)),    # degV
            ],
            out_specs=pl.BlockSpec((tn, Fp), lambda i, k, nnz: (i, 0)),
            scratch_shapes=[pltpu.VMEM((tn, Cp), jnp.float32)]),
        compiler_params=pltpu.CompilerParams(
            dimension_semantics=("parallel", "arbitrary"),
            vmem_limit_bytes=vmem2_limit),
        cost_estimate=ce2,
    )(nnz_ve, Hv, xe, Wp, bp, degV_p)

    return out_p[:N, :F]


if __name__ == "__main__":
    key = jax.random.PRNGKey(0)
    N, E, nnz = 200, 160, 800
    in_channels, heads, out_channels = 32, 8, 8
    F = heads * out_channels

    ks = jax.random.split(key, 8)
    X = jax.random.normal(ks[0], (N, in_channels), jnp.float32)
    # Vertices restricted to [0, 100) so one whole vertex tile-block is empty,
    # exercising the per-tile nnz skip path at runtime.
    vertex = jax.random.randint(ks[1], (nnz,), 0, 100, dtype=jnp.int32)
    edges = jax.random.randint(ks[2], (nnz,), 0, E, dtype=jnp.int32)
    degE = jax.random.uniform(ks[3], (E, 1), jnp.float32, minval=0.5, maxval=1.5)
    degV = jax.random.uniform(ks[4], (N, 1), jnp.float32, minval=0.5, maxval=1.5)
    # nn.Linear(in_channels, heads*out_channels): weight [F, C], bias [F];
    # stored pre-transposed as [C, F].
    W_t = jax.random.normal(ks[5], (in_channels, F), jnp.float32) / jnp.sqrt(
        jnp.float32(in_channels))
    b = jax.random.normal(ks[6], (1, F), jnp.float32) * 0.1

    run = functools.partial(unigcn_conv2, X, vertex, edges, degE, degV, W_t, b,
                            num_edges=E, first_aggregate="mean", use_norm=True,
                            tile_n=128, tile_e=128)
    out_bf16 = jax.block_until_ready(run(compute_dtype=jnp.bfloat16))
    out_f32 = jax.block_until_ready(run(compute_dtype=jnp.float32))

    # Pure-JAX reference using segment ops (mirrors torch_scatter semantics).
    Xve = X[vertex]
    seg_sum = jax.ops.segment_sum(Xve, edges, num_segments=E)
    cnt = jax.ops.segment_sum(jnp.ones((nnz, 1), jnp.float32), edges,
                              num_segments=E)
    Xe = jnp.where(cnt > 0, seg_sum / jnp.maximum(cnt, 1.0), 0.0) * degE
    Xev = Xe[edges]
    Xv = jax.ops.segment_sum(Xev, vertex, num_segments=N) * degV
    rn = jnp.linalg.norm(Xv, axis=1, keepdims=True)
    Xv = Xv * jnp.where(rn > 0, 1.0 / jnp.maximum(rn, 1e-30), 0.0)
    ref = Xv @ W_t + b

    assert out_f32.shape == (N, F) and out_bf16.shape == (N, F)
    assert jnp.allclose(out_f32, ref, atol=1e-4, rtol=1e-4), (
        float(jnp.max(jnp.abs(out_f32 - ref))))
    # bf16 MXU operands with f32 accumulation: ~1e-3..1e-2 rel error budget.
    assert jnp.allclose(out_bf16, ref, atol=4e-2, rtol=4e-2), (
        float(jnp.max(jnp.abs(out_bf16 - ref))))
    print("KERNEL_OK")
</pallas_src>

<mosaic_0001>
module attributes {stable_mosaic.version = 11 : i64} {
  func.func @_edge_agg_kernel(%arg0: i32, %arg1: i32, %arg2: memref<2x2xi32, #tpu.memory_space<smem>>, %arg3: memref<128x128xbf16, #tpu.memory_space<vmem>>, %arg4: memref<256x128xbf16, #tpu.memory_space<vmem>>, %arg5: memref<128x1xf32, #tpu.memory_space<vmem>>, %arg6: memref<128x128xbf16, #tpu.memory_space<vmem>>, %arg7: memref<128x128xf32, #tpu.memory_space<vmem>>) attributes {dimension_semantics = [#tpu.dimension_semantics<parallel>, #tpu.dimension_semantics<arbitrary>], iteration_bounds = array<i64: 2, 2>, scalar_prefetch = 1 : i64, scratch_operands = 1 : i64, tpu.core_type = #tpu.core_type<tc>, window_params = [{transform_indices = @transform_0, window_bounds = array<i64: 128, 128>}, {pipeline_mode = #tpu.pipeline_mode<synchronous>, transform_indices = @transform_1, window_bounds = array<i64: 256, 128>}, {transform_indices = @transform_2, window_bounds = array<i64: 128, 1>}, {transform_indices = @transform_3, window_bounds = array<i64: 128, 128>}]} {
    %c0_i32 = arith.constant 0 : i32
    %0 = arith.cmpi eq, %arg1, %c0_i32 : i32
    %1 = arith.extui %0 : i1 to i32
    %c0_i32_0 = arith.constant 0 : i32
    %2 = arith.cmpi ne, %1, %c0_i32_0 : i32
    scf.if %2 {
      %cst = arith.constant 0.000000e+00 : f32
      %12 = vector.broadcast %cst : f32 to vector<128x128xf32>
      %c0 = arith.constant 0 : index
      %c0_4 = arith.constant 0 : index
      %13 = vector.load %arg7[%c0, %c0_4] : memref<128x128xf32, #tpu.memory_space<vmem>>, vector<128x128xf32>
      tpu.vector_store %arg7[%c0, %c0_4], %12 {strides = array<i32>} : memref<128x128xf32, #tpu.memory_space<vmem>>, vector<128x128xf32>,
    } else {
    }
    %3 = arith.index_cast %arg0 : i32 to index
    %4 = arith.index_cast %arg1 : i32 to index
    %5 = memref.load %arg2[%3, %4] : memref<2x2xi32, #tpu.memory_space<smem>>
    %c0_i32_1 = arith.constant 0 : i32
    %6 = arith.cmpi sgt, %5, %c0_i32_1 : i32
    %7 = arith.extui %6 : i1 to i32
    %c0_i32_2 = arith.constant 0 : i32
    %8 = arith.cmpi ne, %7, %c0_i32_2 : i32
    scf.if %8 {
      %c128_i32 = arith.constant 128 : i32
      %12 = arith.muli %arg1, %c128_i32 : i32
      %13 = tpu.assume_multiple %12, 128 : i32
      %14 = arith.index_cast %13 : i32 to index
      %c0 = arith.constant 0 : index
      %15 = vector.load %arg4[%14, %c0] : memref<256x128xbf16, #tpu.memory_space<vmem>>, vector<128x128xbf16>
      %c0_4 = arith.constant 0 : index
      %c0_5 = arith.constant 0 : index
      %16 = vector.load %arg7[%c0_4, %c0_5] : memref<128x128xf32, #tpu.memory_space<vmem>>, vector<128x128xf32>
      %c0_6 = arith.constant 0 : index
      %c0_7 = arith.constant 0 : index
      %17 = vector.load %arg3[%c0_6, %c0_7] : memref<128x128xbf16, #tpu.memory_space<vmem>>, vector<128x128xbf16>
      %cst = arith.constant dense<0.000000e+00> : vector<128x128xf32>
      %18 = tpu.matmul %17, %15, %cst {dimension_numbers = #tpu.dot_dimension_numbers<[1], [0], [0], [1], [0, 0, 1, 1], [], []>} : vector<128x128xbf16>, vector<128x128xbf16>, vector<128x128xf32> -> vector<128x128xf32>
      %19 = arith.addf %16, %18 : vector<128x128xf32>
      %c0_8 = arith.constant 0 : index
      %c0_9 = arith.constant 0 : index
      %20 = vector.load %arg7[%c0_8, %c0_9] : memref<128x128xf32, #tpu.memory_space<vmem>>, vector<128x128xf32>
      tpu.vector_store %arg7[%c0_8, %c0_9], %19 {strides = array<i32>} : memref<128x128xf32, #tpu.memory_space<vmem>>, vector<128x128xf32>,
    } else {
    }
    %c1_i32 = arith.constant 1 : i32
    %9 = arith.cmpi eq, %arg1, %c1_i32 : i32
    %10 = arith.extui %9 : i1 to i32
    %c0_i32_3 = arith.constant 0 : i32
    %11 = arith.cmpi ne, %10, %c0_i32_3 : i32
    scf.if %11 {
      %c0 = arith.constant 0 : index
      %c0_4 = arith.constant 0 : index
      %12 = vector.load %arg7[%c0, %c0_4] : memref<128x128xf32, #tpu.memory_space<vmem>>, vector<128x128xf32>
      %c0_5 = arith.constant 0 : index
      %c0_6 = arith.constant 0 : index
      %13 = vector.load %arg5[%c0_5, %c0_6] : memref<128x1xf32, #tpu.memory_space<vmem>>, vector<128x1xf32>
      %14 = vector.broadcast %13 : vector<128x1xf32> to vector<128x128xf32>
      %15 = arith.mulf %12, %14 : vector<128x128xf32>
      %16 = arith.truncf %15 : vector<128x128xf32> to vector<128x128xbf16>
      %c0_7 = arith.constant 0 : index
      %c0_8 = arith.constant 0 : index
      %17 = vector.load %arg6[%c0_7, %c0_8] : memref<128x128xbf16, #tpu.memory_space<vmem>>, vector<128x128xbf16>
      tpu.vector_store %arg6[%c0_7, %c0_8], %16 {strides = array<i32>} : memref<128x128xbf16, #tpu.memory_space<vmem>>, vector<128x128xbf16>,
    } else {
    }
    return
  }
  func.func @transform_0(%arg0: i32, %arg1: i32, %arg2: memref<2x2xi32, #tpu.memory_space<smem>>) -> (i32, i32) {
    %c0_i32 = arith.constant 0 : i32
    return %arg0, %arg1 : i32, i32
  }
  func.func @transform_1(%arg0: i32, %arg1: i32, %arg2: memref<2x2xi32, #tpu.memory_space<smem>>) -> (i32, i32) {
    %c0_i32 = arith.constant 0 : i32
    %c0_i32_0 = arith.constant 0 : i32
    %c0_i32_1 = arith.constant 0 : i32
    return %c0_i32, %c0_i32_0 : i32, i32
  }
  func.func @transform_2(%arg0: i32, %arg1: i32, %arg2: memref<2x2xi32, #tpu.memory_space<smem>>) -> (i32, i32) {
    %c0_i32 = arith.constant 0 : i32
    %c0_i32_0 = arith.constant 0 : i32
    return %arg0, %c0_i32 : i32, i32
  }
  func.func @transform_3(%arg0: i32, %arg1: i32, %arg2: memref<2x2xi32, #tpu.memory_space<smem>>) -> (i32, i32) {
    %c0_i32 = arith.constant 0 : i32
    %c0_i32_0 = arith.constant 0 : i32
    return %arg0, %c0_i32 : i32, i32
  }
}

</mosaic_0001>

<bundles_post_ra>
// kernel: tpu_custom_call.1
= control target key start
LH: loop header
LB: loop body
LE: loop exit
PB: predicated region body
PF: predicated region fallthrough
CT: control target
= control target key end

     0   :  { %s1335_s18 = smov [#allocation4]   ;;  %s1624_s0 = inlined_call_operand.vmem [shape: s32[2,2], index: 0, kind: input, shape index: {}]   ;;  %s1625_s1 = inlined_call_operand.vmem [shape: bf16[256,256], index: 1, kind: input, shape index: {}]   ;;  %s1626_s2 = inlined_call_operand.hbm [shape: bf16[256,128], index: 2, kind: input, shape index: {}]   ;;  %s1627_s3 = inlined_call_operand.vmem [shape: f32[256,1], index: 3, kind: input, shape index: {}]   ;;  %s1628_s4 = inlined_call_operand.hbm [shape: bf16[256,128], index: 4, kind: output, shape index: {}]  }
   0x1   :  { %1631 = sst [smem:[#allocation16_spill]] %s1626_s2  ;;  %s10_s17 = sshll.u32 %s1624_s0, 4  ;;  %s11_s17 = int_to_ptr.vmem [resolvable:$true] %s10_s17 }
   0x2   :  { %13 = dma.vmem_to_smem %s11_s17, 32, %s1335_s18, [#allocation3] }
   0x3   :  { %1285 = dma.done.wait [#allocation3], 32 }
   0x4   :  { %1286 = vsyncadd [#allocation3], 4294967264 }
   0x5   :  { %16 = sfence }
   0x6   :  { %17 = vsyncpa [#allocation7], 0 }
   0x7   :  { %18 = vsyncpa [#allocation8], 0 }
   0x8   :  { %20 = vsyncpa [#allocation8 + $0x1], 0  ;;  %s1371_s19 = smov 0   ;;  %s1373_s20 = smov 0  }
   0x9   :  { %s1375_s21 = smov 0   ;;  %s1377_s22 = smov 0  }
   0xa   :  { %s1379_s23 = smov 0   ;;  %s1381_s0 = smov 0  }
   0xb   :  { %s1383_s24 = smov 0   ;;  %s1385_s25 = smov 0  }
   0xc   :  { %s1387_s26 = smov 0   ;;  %s1389_s27 = smov 0  }
   0xd LB: > { %s888_s28 = sadd.s32 4294967295, %s1333_s27   ;;  %s889_s29 = sadd.s32 4294967294, %s1333_s27   ;;  %s1333_s27 = sphi %s1389_s27, %s26_s27   ;;  %s1329_s26 = sphi %s1387_s26, %s1652_s26   ;;  %s1325_s25 = sphi %s1385_s25, %s1651_s25   ;;  %s1321_s24 = sphi %s1383_s24, %s1650_s24   ;;  %s1317_s0 = sphi %s1381_s0, %s1649_s0   ;;  %s1313_s23 = sphi %s1379_s23, %s1648_s23   ;;  %s1309_s22 = sphi %s1377_s22, %s1647_s22   ;;  %s1305_s21 = sphi %s1375_s21, %s1646_s21   ;;  %s1301_s20 = sphi %s1373_s20, %s1645_s20   ;;  %s1297_s19 = sphi %s1371_s19, %s1644_s19  }
   0xe   : > { %s35_s30 = sadd.s32 1, %s1325_s25  ;;  %s38_s5 = sadd.s32 1, %s1329_s26 }
   0xf   : > { %p36_p0 = scmp.ge.s32.totalorder %s35_s30, 2  ;;  %s47_s6 = sadd.s32 1, %s1313_s23 }
  0x10   : > { %p54_p1 = scmp.ne.s32.totalorder %s1313_s23, %s1309_s22  ;;  %p55_p2 = scmp.eq.s32.totalorder %s1333_s27, 0 }
  0x11   : > { %s1654_s30 = smov (%p36_p0, %s35_s30), 0  ;;  %s1656_s5 = smov (!%p36_p0, %s38_s5), %s1329_s26 }
  0x12   : > { %1632 = sst [smem:[#allocation13_spill]] %s1654_s30  ;;  %s43_s7 = ssub.s32 %s1325_s25, %s1654_s30 }
  0x13   : > { %p1434_p3 = por %p55_p2, %p54_p1  ;;  %p40_p4 = scmp.ge.s32.totalorder %s1656_s5, 2 }
  0x14   : > { %s120_s9 = sadd.s32 1, %s1305_s21  ;;  %p130_p5 = scmp.ne.s32.totalorder %s1305_s21, %s1301_s20 }
  0x15   : > { %p131_p6 = scmp.eq.s32.totalorder %s888_s28, 3  ;;  %s1658_s5 = smov (%p40_p4, %s1656_s5), 0 }
  0x16   : > { %1634 = sst [smem:[#allocation14_spill]] %s1658_s5  ;;  %p136_p8 = scmp.ne.s32.totalorder %s1301_s20, %s1297_s19 }
  0x17   : > { %p1443_p7 = por %p131_p6, %p130_p5  ;;  %s42_s11 = ssub.s32 %s1329_s26, %s1658_s5 }
  0x18   : > { %p137_p9 = scmp.eq.s32.totalorder %s889_s29, 3  ;;  %s44_s12 = sor.u32 %s43_s7, %s42_s11 }
  0x19   : > { %p118_p10 = scmp.eq.s32.totalorder %s42_s11, 0  ;;  %p45_p11 = scmp.eq.s32.totalorder %s44_s12, 0 }
  0x1a   : > { %p1451_p12 = por %p137_p9, %p136_p8  ;;  %p890_p13 = scmp.ge.s32.totalorder %s1333_s27, 1 }
  0x1b   : > { %s1456_s14 = scalar_select %p118_p10, %s1305_s21, %s120_s9  }
  0x1c   : > { %s1459_s15 = scalar_select %p45_p11, %s1313_s23, %s47_s6  }
  0x1d   : > { %p144_p0 = scmp.lt.s32.totalorder %s1333_s27, 5  ;;  %p1463_p1 = scmp.eq.s32.totalorder %s888_s28, 0 }
  0x1e   : > { %1637 = sst [smem:[#allocation15_spill]] %s1459_s15  ;;  %s1336_s6 = smov [#allocation6]  }
  0x1f   : > { %p1467_p2 = pnand %p890_p13, %p144_p0  ;;  %s1640_s2 = sld [smem:[#allocation16_spill]] }
  0x20   : > { %s157_s9 = sshll.u32 %s1336_s6, 4  ;;  %s1337_s28 = smov 64   ;;  %s158_s9 = int_to_ptr.vmem [resolvable:$true] %s157_s9 }
  0x21   : > { %p1073_p4 = pneg %p1467_p2  ;;  %s1338_s11 = smov 4  }
  0x22   : > { %p892_p6 = scmp.ge.s32.totalorder %s1333_s27, 4 }
  0x23   : > { %p1074_p5 = pnand %p1463_p1, %p1073_p4 }
  0x24   : > { %167 = sbr.rel (%p892_p6) target bundleno = 63 (0x3f), region = 20 }
  0x25   : > { %s155_s7 = sshll.u32 %s1640_s2, 4  ;;  %s156_s7 = int_to_ptr.hbm [resolvable:$true] %s155_s7 }
  0x26   : > { %1076 = dma.hbm_to_vmem [thread:$0]  (!%p1074_p5), %s156_s7, 2048, %s158_s9, [#allocation7], %s1337_s28, %s1337_s28, %s1338_s11  }
  0x29   : > { %170 = sbr.rel (!%p1434_p3) target bundleno = 63 (0x3f), region = 24  ;;  %s172_s12 = sand.u32 (%p1434_p3), 1, %s1313_s23  }
  0x2a   : > { %s978_s18 = sshll.u32 (%p1434_p3), %s1329_s26, 5  ;;  %s893_s29 = sshll.u32 (%p1434_p3), %s172_s12, 6 }
  0x2b   : > { %s177_s2 = sadd.s32 (%p1434_p3), %s1325_s25, %s978_s18  ;;  %s174_s8 = scalar_lea.vmem (%p1434_p3), [#allocation5], %s893_s29 }
  0x2c   : > { %s896_s6 = sshll.u32 (%p1434_p3), %s177_s2, 2 }
  0x2d   : > { %s1487_s15 = scalar_lea.vmem (%p1434_p3), %s1625_s1, %s896_s6 }
  0x2e   : > { %v196_v0 = vld [vmem:[%s1487_s15] sm:$0xf]  ;;  %v198_v1 = vld [vmem:[%s1487_s15 + $0x8] sm:$0xf]  ;;  %v200_v2 = vld [vmem:[%s1487_s15 + $0x10] sm:$0xf] }
  0x2f   : > { %197 = vst [vmem:[%s174_s8] sm:$0xf] %v196_v0  ;;  %v202_v3 = vld [vmem:[%s1487_s15 + $0x18] sm:$0xf]  ;;  %v204_v4 = vld [vmem:[%s1487_s15 + $0x20] sm:$0xf] }
  0x30   : > { %199 = vst [vmem:[%s174_s8 + $0x4] sm:$0xf] %v198_v1  ;;  %v206_v5 = vld [vmem:[%s1487_s15 + $0x28] sm:$0xf]  ;;  %v208_v6 = vld [vmem:[%s1487_s15 + $0x30] sm:$0xf] }
  0x31   : > { %201 = vst [vmem:[%s174_s8 + $0x8] sm:$0xf] %v200_v2  ;;  %v210_v7 = vld [vmem:[%s1487_s15 + $0x38] sm:$0xf]  ;;  %v212_v8 = vld [vmem:[%s1487_s15 + $0x40] sm:$0xf] }
  0x32   : > { %203 = vst [vmem:[%s174_s8 + $0xc] sm:$0xf] %v202_v3  ;;  %v214_v9 = vld [vmem:[%s1487_s15 + $0x48] sm:$0xf]  ;;  %v216_v10 = vld [vmem:[%s1487_s15 + $0x50] sm:$0xf] }
  0x33   : > { %205 = vst [vmem:[%s174_s8 + $0x10] sm:$0xf] %v204_v4  ;;  %v218_v11 = vld [vmem:[%s1487_s15 + $0x58] sm:$0xf]  ;;  %v220_v12 = vld [vmem:[%s1487_s15 + $0x60] sm:$0xf] }
  0x34   : > { %207 = vst [vmem:[%s174_s8 + $0x14] sm:$0xf] %v206_v5  ;;  %v222_v13 = vld [vmem:[%s1487_s15 + $0x68] sm:$0xf]  ;;  %v224_v14 = vld [vmem:[%s1487_s15 + $0x70] sm:$0xf] }
  0x35   : > { %209 = vst [vmem:[%s174_s8 + $0x18] sm:$0xf] %v208_v6  ;;  %v226_v15 = vld [vmem:[%s1487_s15 + $0x78] sm:$0xf] }
  0x36   : > { %211 = vst [vmem:[%s174_s8 + $0x1c] sm:$0xf] %v210_v7 }
  0x37   : > { %213 = vst [vmem:[%s174_s8 + $0x20] sm:$0xf] %v212_v8 }
  0x38   : > { %215 = vst [vmem:[%s174_s8 + $0x24] sm:$0xf] %v214_v9 }
  0x39   : > { %217 = vst [vmem:[%s174_s8 + $0x28] sm:$0xf] %v216_v10 }
  0x3a   : > { %219 = vst [vmem:[%s174_s8 + $0x2c] sm:$0xf] %v218_v11 }
  0x3b   : > { %221 = vst [vmem:[%s174_s8 + $0x30] sm:$0xf] %v220_v12 }
  0x3c   : > { %223 = vst [vmem:[%s174_s8 + $0x34] sm:$0xf] %v222_v13 }
  0x3d   : > { %225 = vst [vmem:[%s174_s8 + $0x38] sm:$0xf] %v224_v14 }
  0x3e   : > { %227 = vst [vmem:[%s174_s8 + $0x3c] sm:$0xf] %v226_v15 }
  0x3f PF: > { %295 = sbr.rel (%p1467_p2) target bundleno = 491 (0x1eb), region = 69  ;;  %s298_s2 = sand.u32 (!%p1467_p2), 1, %s1309_s22  }
  0x40   : > { %s898_s30 = sshll.u32 (!%p1467_p2), %s298_s2, 6 }
  0x41   : > { %s1508_s5 = scalar_lea.vmem (!%p1467_p2), [#allocation5], %s898_s30 }
  0x44   : > { %1288 = dma.done.wait (%p1463_p1), [#allocation7], 2048  }
  0x45   : > { %1290 = vsyncadd (%p1463_p1), [#allocation7], 4294965248  ;;  %s328_s15 = sand.u32 1, %s1301_s20   ;;  %s901_s7 = sshll.u32 %s1321_s24, 4 }
  0x46   : > { %s900_s9 = sshll.u32 %s328_s15, 6  ;;  %p333_p3 = scmp.lt.s32.totalorder %s901_s7, 31 }
  0x47   : > { %s1523_s12 = scalar_lea.vmem [#allocation9], %s900_s9  ;;  %p903_p8 = scmp.ne.s32.totalorder %s1317_s0, 0 }
  0x48   : > { %s1660_s7 = smov (!%p333_p3, %s901_s7), 31 }
  0x49   : > { %s902_s17 = sshll.u32 %s1660_s7, 3  ;;  %342 = sbr.rel (%p903_p8) target bundleno = 95 (0x5f), region = 81 }
  0x4a   : > { %s1521_s11 = scalar_lea.vmem %s1627_s3, %s902_s17 }
  0x4e   : > { %v1339_v16 = vmov 0.0  }
  0x4f   : > { %343 = vst [vmem:[#allocation2 + $0x30] sm:$0xff] %v1339_v16 }
  0x50   : > { %344 = vst [vmem:[#allocation2] sm:$0xff] %v1339_v16 }
  0x51   : > { %345 = vst [vmem:[#allocation2 + $0x58] sm:$0xff] %v1339_v16 }
  0x52   : > { %346 = vst [vmem:[#allocation2 + $0x18] sm:$0xff] %v1339_v16 }
  0x53   : > { %347 = vst [vmem:[#allocation2 + $0x50] sm:$0xff] %v1339_v16 }
  0x54   : > { %348 = vst [vmem:[#allocation2 + $0x68] sm:$0xff] %v1339_v16 }
  0x55   : > { %349 = vst [vmem:[#allocation2 + $0x8] sm:$0xff] %v1339_v16 }
  0x56   : > { %350 = vst [vmem:[#allocation2 + $0x48] sm:$0xff] %v1339_v16 }
  0x57   : > { %351 = vst [vmem:[#allocation2 + $0x40] sm:$0xff] %v1339_v16 }
  0x58   : > { %352 = vst [vmem:[#allocation2 + $0x20] sm:$0xff] %v1339_v16 }
  0x59   : > { %353 = vst [vmem:[#allocation2 + $0x10] sm:$0xff] %v1339_v16 }
  0x5a   : > { %354 = vst [vmem:[#allocation2 + $0x38] sm:$0xff] %v1339_v16 }
  0x5b   : > { %355 = vst [vmem:[#allocation2 + $0x60] sm:$0xff] %v1339_v16 }
  0x5c   : > { %356 = vst [vmem:[#allocation2 + $0x70] sm:$0xff] %v1339_v16 }
  0x5d   : > { %357 = vst [vmem:[#allocation2 + $0x78] sm:$0xff] %v1339_v16 }
  0x5e   : > { %358 = vst [vmem:[#allocation2 + $0x28] sm:$0xff] %v1339_v16 }
  0x5f PF: > { %s359_s16 = sshra.s32 %s1317_s0, 7  ;;  %s364_s18 = sand.u32 127, %s1317_s0 }
  0x60   : > { %s361_s29 = sadd.s32 %s1321_s24, %s359_s16 }
  0x61   : > { %s904_s6 = sshll.u32 %s361_s29, 7 }
  0x62   : > { %s365_s8 = sadd.s32 %s904_s6, %s364_s18 }
  0x63   : > { %s366_s2 = sld [smem:[#allocation4 + %s365_s8]] }
  0x69   : > { %p905_p9 = scmp.le.s32.totalorder %s366_s2, 0 }
  0x6a   : > { %s906_s30 = sshll.u32 (!%p905_p9), %s1317_s0, 7 }
  0x6b   : > { %370 = sbr.rel (%p905_p9) target bundleno = 305 (0x131), region = 85  ;;  %s372_s7 = sshra.s32 (!%p905_p9), %s906_s30, 3 }
  0x6c   : > { %s907_s9 = sshll.u32 (!%p905_p9), %s372_s7, 2 }
  0x6d   : > { %s1530_s17 = scalar_lea.vmem (!%p905_p9), [#allocation6], %s907_s9 }
  0x70   : > { %v986_v17 = vld [vmem:[%s1530_s17 + $0x38] sm:$0xff]  ;;  %v985_v18 = vld [vmem:[%s1530_s17 + $0x30] sm:$0xff]  ;;  %v984_v19 = vld [vmem:[%s1530_s17 + $0x28] sm:$0xff] }
  0x71   : > { %520 = vmatpush.bf16.msra.mxu0 %v986_v17  ;;  %1043 = vmatpush.bf16.msra.mxu1 %v986_v17  ;;  %v983_v20 = vld [vmem:[%s1530_s17 + $0x20] sm:$0xff]  ;;  %v982_v21 = vld [vmem:[%s1530_s17 + $0x18] sm:$0xff]  ;;  %v981_v22 = vld [vmem:[%s1530_s17 + $0x10] sm:$0xff] }
  0x72   : > { %1044 = vmatpush.bf16.msra.mxu2 %v986_v17  ;;  %1045 = vmatpush.bf16.msra.mxu3 %v986_v17  ;;  %v980_v23 = vld [vmem:[%s1530_s17 + $0x8] sm:$0xff]  ;;  %v979_v24 = vld [vmem:[%s1530_s17] sm:$0xff]  ;;  %v989_v26 = vld [vmem:[%s1508_s5 + $0x10] sm:$0xff] }
  0x73   : > { %v987_v25 = vld [vmem:[%s1508_s5] sm:$0xff]  ;;  %v993_v28 = vld [vmem:[%s1508_s5 + $0x30] sm:$0xff]  ;;  %v988_v29 = vld [vmem:[%s1508_s5 + $0x8] sm:$0xff] }
  0x74   : > { %v991_v27 = vld [vmem:[%s1508_s5 + $0x20] sm:$0xff]  ;;  %v990_v30 = vld [vmem:[%s1508_s5 + $0x18] sm:$0xff]  ;;  %v992_v31 = vld [vmem:[%s1508_s5 + $0x28] sm:$0xff] }
  0x75   : > { %521 = vmatpush.bf16.msra.mxu0 %v985_v18  ;;  %1046 = vmatpush.bf16.msra.mxu1 %v985_v18  ;;  %v994_v32 = vld [vmem:[%s1508_s5 + $0x38] sm:$0xff]  ;;  %v392_v33 = vld [vmem:[#allocation2 + $0x30] sm:$0xff]  ;;  %v400_v39 = vld [vmem:[#allocation2 + $0x40] sm:$0xff] }
  0x76   : > { %1047 = vmatpush.bf16.msra.mxu2 %v985_v18  ;;  %1048 = vmatpush.bf16.msra.mxu3 %v985_v18  ;;  %v396_v34 = vld [vmem:[#allocation2 + $0x50] sm:$0xff]  ;;  %v404_v40 = vld [vmem:[#allocation2 + $0x60] sm:$0xff]  ;;  %v397_v42 = vld [vmem:[#allocation2 + $0x68] sm:$0xff] }
  0x77   : > { %v393_v41 = vld [vmem:[#allocation2] sm:$0xff]  ;;  %v405_v52 = vld [vmem:[#allocation2 + $0x70] sm:$0xff]  ;;  %v394_v53 = vld [vmem:[#allocation2 + $0x58] sm:$0xff] }
  0x78   : > { %v401_v51 = vld [vmem:[#allocation2 + $0x20] sm:$0xff]  ;;  %v398_v54 = vld [vmem:[#allocation2 + $0x8] sm:$0xff]  ;;  %v402_v63 = vld [vmem:[#allocation2 + $0x10] sm:$0xff] }
  0x79   : > { %522 = vmatpush.bf16.msra.mxu0 %v984_v19  ;;  %1049 = vmatpush.bf16.msra.mxu1 %v984_v19  ;;  %v406_v0 = vld [vmem:[#allocation2 + $0x78] sm:$0xff]  ;;  %v399_v2 = vld [vmem:[#allocation2 + $0x48] sm:$0xff] }
  0x7a   : > { %1050 = vmatpush.bf16.msra.mxu2 %v984_v19  ;;  %1051 = vmatpush.bf16.msra.mxu3 %v984_v19  ;;  %v395_v1 = vld [vmem:[#allocation2 + $0x18] sm:$0xff]  ;;  %v407_v12 = vld [vmem:[#allocation2 + $0x28] sm:$0xff] }
  0x7b   : > { %v403_v11 = vld [vmem:[#allocation2 + $0x38] sm:$0xff] }
  0x7d   : > { %523 = vmatpush.bf16.msra.mxu0 %v983_v20  ;;  %1052 = vmatpush.bf16.msra.mxu1 %v983_v20 }
  0x7e   : > { %1053 = vmatpush.bf16.msra.mxu2 %v983_v20  ;;  %1054 = vmatpush.bf16.msra.mxu3 %v983_v20 }
  0x81   : > { %524 = vmatpush.bf16.msra.mxu0 %v982_v21  ;;  %1055 = vmatpush.bf16.msra.mxu1 %v982_v21 }
  0x82   : > { %1056 = vmatpush.bf16.msra.mxu2 %v982_v21  ;;  %1057 = vmatpush.bf16.msra.mxu3 %v982_v21 }
  0x85   : > { %525 = vmatpush.bf16.msra.mxu0 %v981_v22  ;;  %1058 = vmatpush.bf16.msra.mxu1 %v981_v22 }
  0x86   : > { %1059 = vmatpush.bf16.msra.mxu2 %v981_v22  ;;  %1060 = vmatpush.bf16.msra.mxu3 %v981_v22 }
  0x89   : > { %526 = vmatpush.bf16.msra.mxu0 %v980_v23  ;;  %1061 = vmatpush.bf16.msra.mxu1 %v980_v23 }
  0x8a   : > { %1062 = vmatpush.bf16.msra.mxu2 %v980_v23  ;;  %1063 = vmatpush.bf16.msra.mxu3 %v980_v23 }
  0x8d   : > { %527 = vmatpush.bf16.msra.mxu0 %v979_v24  ;;  %1064 = vmatpush.bf16.msra.mxu1 %v979_v24 }
  0x8e   : > { %1065 = vmatpush.bf16.msra.mxu2 %v979_v24  ;;  %1066 = vmatpush.bf16.msra.mxu3 %v979_v24 }
  0x90   : > { %528 = vmatmul.bf16.vlgmr.msra.gmra.mxu0 %v987_v25  ;;  %538 = vmatmul.bf16.vlgmr.msra.gmra.mxu1 %v989_v26 }
  0x91   : > { %548 = vmatmul.bf16.vlgmr.msra.gmra.mxu2 %v991_v27  ;;  %558 = vmatmul.bf16.vlgmr.msra.gmra.mxu3 %v993_v28 }
  0xa0   : > { %533 = vmatmul.bf16.gmra.mxu0 %v988_v29  ;;  %543 = vmatmul.bf16.gmra.mxu1 %v990_v30 }
  0xa1   : > { %553 = vmatmul.bf16.gmra.mxu2 %v992_v31  ;;  %563 = vmatmul.bf16.gmra.mxu3 %v994_v32 }
 0x10d   : > { %v529_v35 = vpop.f32.mrf.mxu0  ;;  %v539_v36 = vpop.f32.mrf.mxu1 }
 0x10e   : > { %v569_v37 = vadd.f32 %v529_v35, %v392_v33  ;;  %v573_v38 = vadd.f32 %v539_v36, %v396_v34 }
 0x110   : > { %585 = vst [vmem:[#allocation2 + $0x30] sm:$0xff] %v569_v37 }
 0x111   : > { %589 = vst [vmem:[#allocation2 + $0x50] sm:$0xff] %v573_v38 }
 0x114   : > { %v549_v43 = vpop.f32.mrf.mxu2  ;;  %v559_v44 = vpop.f32.mrf.mxu3 }
 0x115   : > { %v577_v45 = vadd.f32 %v549_v43, %v400_v39  ;;  %v581_v46 = vadd.f32 %v559_v44, %v404_v40  ;;  %v531_v47 = vpop.f32.mrf.mxu0  ;;  %v541_v48 = vpop.f32.mrf.mxu1 }
 0x116   : > { %v570_v49 = vadd.f32 %v531_v47, %v393_v41  ;;  %v574_v50 = vadd.f32 %v541_v48, %v397_v42 }
 0x117   : > { %593 = vst [vmem:[#allocation2 + $0x40] sm:$0xff] %v577_v45 }
 0x118   : > { %597 = vst [vmem:[#allocation2 + $0x60] sm:$0xff] %v581_v46 }
 0x119   : > { %586 = vst [vmem:[#allocation2] sm:$0xff] %v570_v49 }
 0x11a   : > { %590 = vst [vmem:[#allocation2 + $0x68] sm:$0xff] %v574_v50 }
 0x11c   : > { %v551_v55 = vpop.f32.mrf.mxu2  ;;  %v561_v56 = vpop.f32.mrf.mxu3 }
 0x11d   : > { %v578_v57 = vadd.f32 %v551_v55, %v401_v51  ;;  %v582_v58 = vadd.f32 %v561_v56, %v405_v52  ;;  %v534_v59 = vpop.f32.mrf.mxu0  ;;  %v544_v60 = vpop.f32.mrf.mxu1 }
 0x11e   : > { %v571_v61 = vadd.f32 %v534_v59, %v394_v53  ;;  %v575_v62 = vadd.f32 %v544_v60, %v398_v54 }
 0x11f   : > { %594 = vst [vmem:[#allocation2 + $0x20] sm:$0xff] %v578_v57 }
 0x120   : > { %598 = vst [vmem:[#allocation2 + $0x70] sm:$0xff] %v582_v58 }
 0x121   : > { %587 = vst [vmem:[#allocation2 + $0x58] sm:$0xff] %v571_v61 }
 0x122   : > { %591 = vst [vmem:[#allocation2 + $0x8] sm:$0xff] %v575_v62 }
 0x124   : > { %v554_v3 = vpop.f32.mrf.mxu2  ;;  %v564_v4 = vpop.f32.mrf.mxu3 }
 0x125   : > { %v579_v5 = vadd.f32 %v554_v3, %v402_v63  ;;  %v583_v6 = vadd.f32 %v564_v4, %v406_v0  ;;  %v536_v7 = vpop.f32.mrf.mxu0  ;;  %v546_v8 = vpop.f32.mrf.mxu1 }
 0x126   : > { %v572_v9 = vadd.f32 %v536_v7, %v395_v1  ;;  %v576_v10 = vadd.f32 %v546_v8, %v399_v2 }
 0x127   : > { %595 = vst [vmem:[#allocation2 + $0x10] sm:$0xff] %v579_v5 }
 0x128   : > { %599 = vst [vmem:[#allocation2 + $0x78] sm:$0xff] %v583_v6 }
 0x129   : > { %588 = vst [vmem:[#allocation2 + $0x18] sm:$0xff] %v572_v9 }
 0x12a   : > { %592 = vst [vmem:[#allocation2 + $0x48] sm:$0xff] %v576_v10 }
 0x12c   : > { %v556_v13 = vpop.f32.mrf.mxu2  ;;  %v566_v14 = vpop.f32.mrf.mxu3 }
 0x12d   : > { %v580_v15 = vadd.f32 %v556_v13, %v403_v11  ;;  %v584_v16 = vadd.f32 %v566_v14, %v407_v12 }
 0x12f   : > { %596 = vst [vmem:[#allocation2 + $0x38] sm:$0xff] %v580_v15 }
 0x130   : > { %600 = vst [vmem:[#allocation2 + $0x28] sm:$0xff] %v584_v16 }
 0x131 PF: > { %p972_p10 = scmp.ne.s32.totalorder %s1317_s0, 1 }
 0x133   : > { %604 = sbr.rel (%p972_p10) target bundleno = 475 (0x1db), region = 89 }
 0x138   : > { %v625_v17 = vld [vmem:[%s1521_s11 + $0x20] sm:$0xff]  ;;  %v623_v18 = vld [vmem:[%s1521_s11 + $0x10] sm:$0xff]  ;;  %v1340_v20 = vmov 0   ;;  %v626_v21 = vld [vmem:[%s1521_s11 + $0x28] sm:$0xff] }
 0x139   : > { %v621_v19 = vld [vmem:[%s1521_s11] sm:$0xff]  ;;  %1174 = vset.pattern.permute.xlu2 %v1340_v20  ;;  %1173 = vset.pattern.permute.xlu1 %v1340_v20  ;;  %v624_v22 = vld [vmem:[%s1521_s11 + $0x18] sm:$0xff]  ;;  %v622_v23 = vld [vmem:[%s1521_s11 + $0x8] sm:$0xff] }
 0x13a   : > { %1172 = vset.pattern.permute.xlu0 %v1340_v20  ;;  %659 = vperm.xlu2 %1174, %v625_v17   ;;  %v629_v24 = vld [vmem:[%s1521_s11 + $0x40] sm:$0xff]  ;;  %v628_v25 = vld [vmem:[%s1521_s11 + $0x38] sm:$0xff]  ;;  %v627_v26 = vld [vmem:[%s1521_s11 + $0x30] sm:$0xff] }
 0x13b   : > { %649 = vperm.xlu1 %1173, %v623_v18   ;;  %639 = vperm.xlu0 %1172, %v621_v19   ;;  %v632_v27 = vld [vmem:[%s1521_s11 + $0x58] sm:$0xff]  ;;  %v631_v28 = vld [vmem:[%s1521_s11 + $0x50] sm:$0xff]  ;;  %v630_v29 = vld [vmem:[%s1521_s11 + $0x48] sm:$0xff] }
 0x13c   : > { %v635_v30 = vld [vmem:[%s1521_s11 + $0x70] sm:$0xff]  ;;  %v634_v31 = vld [vmem:[%s1521_s11 + $0x68] sm:$0xff]  ;;  %v633_v32 = vld [vmem:[%s1521_s11 + $0x60] sm:$0xff] }
 0x13d   : > { %v636_v33 = vld [vmem:[%s1521_s11 + $0x78] sm:$0xff]  ;;  %v609_v35 = vld [vmem:[#allocation2 + $0x50] sm:$0xff]  ;;  %v610_v36 = vld [vmem:[#allocation2 + $0x68] sm:$0xff] }
 0x13e   : > { %v607_v43 = vld [vmem:[#allocation2 + $0x58] sm:$0xff]  ;;  %v605_v44 = vld [vmem:[#allocation2 + $0x30] sm:$0xff]  ;;  %v606_v46 = vld [vmem:[#allocation2] sm:$0xff] }
 0x13f   : > { %v608_v45 = vld [vmem:[#allocation2 + $0x18] sm:$0xff]  ;;  %v612_v56 = vld [vmem:[#allocation2 + $0x48] sm:$0xff]  ;;  %v613_v63 = vld [vmem:[#allocation2 + $0x40] sm:$0xff] }
 0x140   : > { %v611_v57 = vld [vmem:[#allocation2 + $0x8] sm:$0xff]  ;;  %v616_v0 = vld [vmem:[#allocation2 + $0x38] sm:$0xff]  ;;  %v615_v1 = vld [vmem:[#allocation2 + $0x10] sm:$0xff] }
 0x141   : > { %v614_v2 = vld [vmem:[#allocation2 + $0x20] sm:$0xff]  ;;  %v618_v12 = vld [vmem:[#allocation2 + $0x70] sm:$0xff]  ;;  %v619_v20 = vld [vmem:[#allocation2 + $0x78] sm:$0xff] }
 0x142   : > { %664 = vperm.xlu2 %1174, %v626_v21   ;;  %v617_v13 = vld [vmem:[#allocation2 + $0x60] sm:$0xff]  ;;  %v620_v21 = vld [vmem:[#allocation2 + $0x28] sm:$0xff] }
 0x143   : > { %654 = vperm.xlu1 %1173, %v624_v22   ;;  %644 = vperm.xlu0 %1172, %v622_v23  }
 0x14a   : > { %679 = vperm.xlu2 %1174, %v629_v24  }
 0x14b   : > { %674 = vperm.xlu1 %1173, %v628_v25   ;;  %669 = vperm.xlu0 %1172, %v627_v26  }
 0x152   : > { %694 = vperm.xlu2 %1174, %v632_v27  }
 0x153   : > { %689 = vperm.xlu1 %1173, %v631_v28   ;;  %684 = vperm.xlu0 %1172, %v630_v29  }
 0x15a   : > { %709 = vperm.xlu2 %1174, %v635_v30  }
 0x15b   : > { %704 = vperm.xlu1 %1173, %v634_v31   ;;  %699 = vperm.xlu0 %1172, %v633_v32  }
 0x163   : > { %714 = vperm.xlu0 %1172, %v636_v33  }
 0x194   : > { %v660_v34 = vpop.permute.xlu2 %659 }
 0x195   : > { %v721_v37 = vmul.f32 %v660_v34, %v609_v35 }
 0x19c   : > { %v665_v38 = vpop.permute.xlu2 %664 }
 0x19d   : > { %v722_v39 = vmul.f32 %v665_v38, %v610_v36 }
 0x19f   : > { %v1009_v40 = vpack.c.bf16 %v722_v39, %v721_v37 }
 0x1a1   : > { %1037 = vst [vmem:[%s1523_s12 + $0x10] sm:$0xff] %v1009_v40  }
 0x1a4   : > { %v680_v55 = vpop.permute.xlu2 %679 }
 0x1a5   : > { %v725_v6 = vmul.f32 %v680_v55, %v613_v63 }
 0x1ac   : > { %v695_v3 = vpop.permute.xlu2 %694 }
 0x1ad   : > { %v650_v41 = vpop.permute.xlu1 %649  ;;  %v640_v42 = vpop.permute.xlu0 %639  ;;  %v728_v7 = vmul.f32 %v695_v3, %v616_v0 }
 0x1ae   : > { %v719_v47 = vmul.f32 %v650_v41, %v607_v43  ;;  %v717_v50 = vmul.f32 %v640_v42, %v605_v44 }
 0x1b4   : > { %v710_v19 = vpop.permute.xlu2 %709 }
 0x1b5   : > { %v655_v48 = vpop.permute.xlu1 %654  ;;  %v645_v49 = vpop.permute.xlu0 %644  ;;  %v731_v23 = vmul.f32 %v710_v19, %v619_v20 }
 0x1b6   : > { %v720_v51 = vmul.f32 %v655_v48, %v608_v45  ;;  %v718_v52 = vmul.f32 %v645_v49, %v606_v46 }
 0x1b8   : > { %v1004_v53 = vpack.c.bf16 %v720_v51, %v719_v47  ;;  %v999_v54 = vpack.c.bf16 %v718_v52, %v717_v50 }
 0x1ba   : > { %1036 = vst [vmem:[%s1523_s12 + $0x8] sm:$0xff] %v1004_v53  }
 0x1bb   : > { %1000 = vst [vmem:[%s1523_s12] sm:$0xff] %v999_v54  }
 0x1bd   : > { %v675_v58 = vpop.permute.xlu1 %674  ;;  %v670_v59 = vpop.permute.xlu0 %669 }
 0x1be   : > { %v724_v60 = vmul.f32 %v675_v58, %v612_v56  ;;  %v723_v61 = vmul.f32 %v670_v59, %v611_v57 }
 0x1c0   : > { %v1014_v62 = vpack.c.bf16 %v724_v60, %v723_v61 }
 0x1c2   : > { %1038 = vst [vmem:[%s1523_s12 + $0x18] sm:$0xff] %v1014_v62  }
 0x1c5   : > { %v690_v4 = vpop.permute.xlu1 %689  ;;  %v685_v5 = vpop.permute.xlu0 %684 }
 0x1c6   : > { %v727_v8 = vmul.f32 %v690_v4, %v615_v1  ;;  %v726_v9 = vmul.f32 %v685_v5, %v614_v2 }
 0x1c8   : > { %v1024_v10 = vpack.c.bf16 %v728_v7, %v727_v8  ;;  %v1019_v11 = vpack.c.bf16 %v726_v9, %v725_v6 }
 0x1ca   : > { %1040 = vst [vmem:[%s1523_s12 + $0x28] sm:$0xff] %v1024_v10  }
 0x1cb   : > { %1039 = vst [vmem:[%s1523_s12 + $0x20] sm:$0xff] %v1019_v11  }
 0x1cd   : > { %v705_v14 = vpop.permute.xlu1 %704  ;;  %v700_v15 = vpop.permute.xlu0 %699 }
 0x1ce   : > { %v730_v16 = vmul.f32 %v705_v14, %v618_v12  ;;  %v729_v17 = vmul.f32 %v700_v15, %v617_v13 }
 0x1d0   : > { %v1029_v18 = vpack.c.bf16 %v730_v16, %v729_v17 }
 0x1d2   : > { %1041 = vst [vmem:[%s1523_s12 + $0x30] sm:$0xff] %v1029_v18  }
 0x1d5   : > { %v715_v22 = vpop.permute.xlu0 %714 }
 0x1d6   : > { %v732_v24 = vmul.f32 %v715_v22, %v620_v21 }
 0x1d8   : > { %v1034_v25 = vpack.c.bf16 %v732_v24, %v731_v23 }
 0x1da   : > { %1042 = vst [vmem:[%s1523_s12 + $0x38] sm:$0xff] %v1034_v25  }
 0x1db PF: > { %s995_s0 = sshll.u32 %s1321_s24, 6  ;;  %s778_s11 = sshll.u32 %s1523_s12, 4  ;;  %s779_s11 = int_to_ptr.vmem [resolvable:$true] %s778_s11 }
 0x1dc   : > { %s777_s22 = scalar_lea.hbm %s1628_s4, %s995_s0  ;;  %s766_s18 = scalar_lea.sflag [#allocation8], %s328_s15 }
 0x1dd   : > { %s780_s16 = sshll.u32 %s777_s22, 4  ;;  %s1237_s24 = scalar_lea.hbm %s1628_s4, 128  ;;  %s781_s16 = int_to_ptr.hbm [resolvable:$true] %s780_s16 }
 0x1de   : > { %s1231_s29 = sshra.s32 %s781_s16, 4  ;;  %s1232_s29 = int_to_ptr.hbm [resolvable:$true] %s1231_s29 }
 0x1df   : > { %s1233_s6 = scalar_lea.hbm %s1232_s29, 64  ;;  %p1238_p1 = scmp.lt.s32.totalorder %s1232_s29, %s1628_s4 }
 0x1e0   : > { %p1234_p11 = scmp.ne.s32.totalorder %s1232_s29, %s1233_s6  ;;  %p1239_p2 = scmp.lt.s32.totalorder %s1237_s24, %s1233_s6 }
 0x1e2   : > { %p1235_p13 = pnand %p1234_p11, %p1443_p7  ;;  %p1240_p4 = por %p1239_p2, %p1238_p1 }
 0x1e4   : > { %p1236_p0 = pneg %p1235_p13 }
 0x1e6   : > { %p1241_p5 = pnand %p1240_p4, %p1236_p0 }
 0x1e8   : > { %1244 = shalt.err (!%p1241_p5)
}
 0x1e9   : > { %s1341_s15 = smov 64   ;;  %s1342_s12 = smov 4  }
 0x1ea   : > { %1071 = dma.vmem_to_hbm [thread:$0]  (%p1443_p7), %s779_s11, 1024, %s781_s16, %s766_s18, %s1341_s15, %s1341_s15, %s1342_s12  }
 0x1eb PF: > { %p1083_p6 = scmp.ge.s32.totalorder %s1333_s27, 2  ;;  %s795_s9 = sand.u32 1, %s1297_s19  }
 0x1ec   : > { %s796_s17 = scalar_lea.sflag [#allocation8], %s795_s9 }
 0x1ed   : > { %p1078_p3 = pnand %p1083_p6, %p1451_p12 }
 0x1ef   : > { %p1079_p8 = pneg %p1078_p3 }
 0x1f1   : > { %1292 = dma.done.wait (%p1079_p8), %s796_s17, 1024  }
 0x1f2   : > { %1294 = vsyncadd (%p1079_p8), %s796_s17, 4294966272  ;;  %s26_s27 = sadd.s32 1, %s1333_s27   ;;  %s1641_s10 = sld [smem:[#allocation15_spill]] }
 0x1f3   : > { %p23_p9 = scmp.ge.s32.totalorder %s26_s27, 6   ;;  %s1642_s5 = sld [smem:[#allocation13_spill]] }
 0x1f4   : > { %s1643_s28 = sld [smem:[#allocation14_spill]]  ;;  %s1644_s19 = smov %s1301_s20 }
 0x1f5   : > { %s1645_s20 = smov %s1305_s21  ;;  %s1646_s21 = smov %s1456_s14 }
 0x1f6   : > { %s1647_s22 = smov %s1313_s23  ;;  %s1649_s0 = smov %s1325_s25 }
 0x1f7   : > { %s1650_s24 = smov %s1329_s26  ;;  %25 = sbr.rel (!%p23_p9) target bundleno = 13 (0xd), region = 134 }
 0x1f8   : > { %s1648_s23 = smov %s1641_s10 }
 0x1f9   : > { %s1651_s25 = smov %s1642_s5 }
 0x1fa   : > { %s1652_s26 = smov %s1643_s28 }
 0x1fc   :  { %802 = vsyncpa [#allocation7], 1 }
 0x1fd   :  { %804 = vsyncpa [#allocation7 + $0x1], 1 }
 0x1fe   :  { %805 = vsyncpa [#allocation8], 1 }
 0x1ff   :  { %807 = vsyncpa [#allocation8 + $0x1], 1 }

</bundles_post_ra>
